<compile_context>
chip_gen: v7x
topology: tpu7x:2x2x1
jax: 0.10.0
libtpu: 0.0.40
codegen_flags: <defaults>
</compile_context>

<pallas_src>
import jax
import jax.numpy as jnp
from jax.experimental import pallas as pl
from jax.experimental.pallas import tpu as pltpu


def _gather_score_kernel(u_ids_ref, m_ids_ref, scores_ref, b_ref, out_ref):
    # u_ids_ref / m_ids_ref: (1, TB) int32 id tiles (movie ids pre-offset by
    #   n_users so both index into the fused score column).
    # scores_ref: (n_total, 1) f32 resident per-row score column
    #   [s_u ; s_m] where s_* = table @ w_*^T.
    # b_ref: (1,) f32 bias in SMEM.
    # out_ref: (1, TB) f32 lane-dense output row.
    n_total = scores_ref.shape[0]
    tb = out_ref.shape[1]

    rows = jax.lax.broadcasted_iota(jnp.int32, (n_total, tb), 0)   # (n_total, TB)
    # "Two-hot" membership: user rows [0, n_users) and movie rows
    # [n_users, n_total) are disjoint, so OR == sum of the two one-hots.
    hit = (rows == u_ids_ref[...]) | (rows == m_ids_ref[...])      # (n_total, TB)
    picked = jnp.where(hit, scores_ref[...], 0.0)                  # (n_total, TB) f32
    val = jnp.sum(picked, axis=0, keepdims=True) + b_ref[0]        # (1, TB)
    out_ref[...] = val.astype(out_ref.dtype)


def _round_up(x, m):
    return (x + m - 1) // m * m


def _choose_batch_tile(b_pad, cap=512, min_grid=2):
    """Largest multiple of 128 that divides b_pad, is <= cap lanes, and (when
    possible) leaves >= min_grid grid steps for dual-TensorCore sharding."""
    n = b_pad // 128
    best = 1
    for d in range(1, n + 1):
        if n % d:
            continue
        if d * 128 > cap:
            continue
        if n // d < min_grid and n >= min_grid:
            continue
        best = d
    return best * 128


def recsys_forward(users, movies, user_emb, movie_emb, w, b, *, tb_cap=512):
    """Pallas forward pass of RecSysModel.

    users, movies: int [B]
    user_emb:  float32 [n_users, D]
    movie_emb: float32 [n_movies, D]
    w: float32 [1, 2*D]   (nn.Linear weight)
    b: float32 [1]        (nn.Linear bias)
    returns: float32 [B, 1]
    """
    B = users.shape[0]
    n_users, D = user_emb.shape
    n_movies = movie_emb.shape[0]
    n_total = n_users + n_movies

    # ---- Algebraic collapse (parameter-only, batch-independent) -------------
    # concat([ue, me]) @ W^T + b == s_u[uid] + s_m[mid] + b.
    # Exact f32 (elementwise mul + reduce -> no bf16 MXU pass), natural
    # (n_rows, D) layout -> no per-call full-table transpose through HBM.
    wu = w[0, :D].astype(jnp.float32)
    wm = w[0, D:].astype(jnp.float32)
    s_u = jnp.sum(user_emb.astype(jnp.float32) * wu[None, :], axis=1)    # (n_users,)
    s_m = jnp.sum(movie_emb.astype(jnp.float32) * wm[None, :], axis=1)   # (n_movies,)
    scores = jnp.concatenate([s_u, s_m]).reshape(n_total, 1)             # (n_total, 1)

    # ---- Batch tiling --------------------------------------------------------
    b_pad = _round_up(B, 128)                 # pad only to the 128-lane granule
    tb = _choose_batch_tile(b_pad, cap=tb_cap)
    grid_len = b_pad // tb

    users_p = jnp.pad(users.astype(jnp.int32), (0, b_pad - B)).reshape(grid_len, tb)
    movies_off = movies.astype(jnp.int32) + n_users   # index into fused score column
    movies_p = jnp.pad(movies_off, (0, b_pad - B)).reshape(grid_len, tb)

    b_smem = b.astype(jnp.float32).reshape(1)

    out = pl.pallas_call(
        _gather_score_kernel,
        out_shape=jax.ShapeDtypeStruct((grid_len, tb), jnp.float32),
        grid=(grid_len,),
        in_specs=[
            pl.BlockSpec((1, tb), lambda g: (g, 0)),            # user id tile
            pl.BlockSpec((1, tb), lambda g: (g, 0)),            # movie id tile (offset)
            pl.BlockSpec((n_total, 1), lambda g: (0, 0)),        # resident score column
            pl.BlockSpec(memory_space=pltpu.MemorySpace.SMEM),   # bias scalar
        ],
        out_specs=pl.BlockSpec((1, tb), lambda g: (g, 0)),       # lane-dense output row
        compiler_params=pltpu.CompilerParams(
            dimension_semantics=("parallel",)),
    )(users_p, movies_p, scores, b_smem)

    # Note: out-of-range ids contribute zero (output = bias) instead of erroring
    # like PyTorch; padded batch lanes are computed with id 0 and sliced off.
    return out.reshape(b_pad, 1)[:B]


def recsys_reference(users, movies, user_emb, movie_emb, w, b):
    ue = user_emb[users]                            # (B, D)
    me = movie_emb[movies]                          # (B, D)
    x = jnp.concatenate([ue, me], axis=1)           # (B, 2D)
    # Elementwise form of x @ w.T + b (exact f32, no MXU precision ambiguity).
    return jnp.sum(x * w, axis=1, keepdims=True) + b


if __name__ == "__main__":
    n_users, n_movies, n_emb = 64, 128, 32
    batch = 8

    key = jax.random.PRNGKey(0)
    k_ue, k_me, k_w, k_b, k_u, k_m = jax.random.split(key, 6)

    # Deterministic parameter init (shapes match nn.Embedding / nn.Linear).
    user_emb = jax.random.normal(k_ue, (n_users, n_emb), dtype=jnp.float32)
    movie_emb = jax.random.normal(k_me, (n_movies, n_emb), dtype=jnp.float32)
    lim = 1.0 / jnp.sqrt(2.0 * n_emb)
    w = jax.random.uniform(k_w, (1, 2 * n_emb), minval=-lim, maxval=lim,
                           dtype=jnp.float32)
    b = jax.random.uniform(k_b, (1,), minval=-lim, maxval=lim,
                           dtype=jnp.float32)

    users = jax.random.randint(k_u, (batch,), 0, n_users, dtype=jnp.int32)
    movies = jax.random.randint(k_m, (batch,), 0, n_movies, dtype=jnp.int32)

    out = recsys_forward(users, movies, user_emb, movie_emb, w, b)
    out = jax.block_until_ready(out)

    ref = recsys_reference(users, movies, user_emb, movie_emb, w, b)
    assert out.shape == (batch, 1)
    assert jnp.allclose(out, ref, atol=1e-4, rtol=1e-4), (out, ref)
    print("KERNEL_OK")
</pallas_src>

<mosaic_0001>
module attributes {stable_mosaic.version = 11 : i64} {
  func.func @_gather_score_kernel(%arg0: i32, %arg1: memref<1x128xi32, #tpu.memory_space<vmem>>, %arg2: memref<1x128xi32, #tpu.memory_space<vmem>>, %arg3: memref<192x1xf32, #tpu.memory_space<vmem>>, %arg4: memref<1xf32, #tpu.memory_space<smem>>, %arg5: memref<1x128xf32, #tpu.memory_space<vmem>>) attributes {dimension_semantics = [#tpu.dimension_semantics<parallel>], iteration_bounds = array<i64: 1>, scalar_prefetch = 0 : i64, scratch_operands = 0 : i64, tpu.core_type = #tpu.core_type<tc>, window_params = [{transform_indices = @transform_0, window_bounds = array<i64: 1, 128>}, {transform_indices = @transform_1, window_bounds = array<i64: 1, 128>}, {pipeline_mode = #tpu.pipeline_mode<synchronous>, transform_indices = @transform_2, window_bounds = array<i64: 192, 1>}, {transform_indices = @transform_3, window_bounds = array<i64: 1>}, {transform_indices = @transform_4, window_bounds = array<i64: 1, 128>}]} {
    %0 = tpu.iota {dimensions = array<i32: 0>} : vector<192x128xi32>
    %c0 = arith.constant 0 : index
    %c0_0 = arith.constant 0 : index
    %1 = vector.load %arg1[%c0, %c0_0] : memref<1x128xi32, #tpu.memory_space<vmem>>, vector<1x128xi32>
    %2 = vector.broadcast %1 : vector<1x128xi32> to vector<192x128xi32>
    %3 = arith.cmpi eq, %0, %2 : vector<192x128xi32>
    %c0_1 = arith.constant 0 : index
    %c0_2 = arith.constant 0 : index
    %4 = vector.load %arg2[%c0_1, %c0_2] : memref<1x128xi32, #tpu.memory_space<vmem>>, vector<1x128xi32>
    %5 = vector.broadcast %4 : vector<1x128xi32> to vector<192x128xi32>
    %6 = arith.cmpi eq, %0, %5 : vector<192x128xi32>
    %7 = arith.ori %3, %6 : vector<192x128xi1>
    %c0_3 = arith.constant 0 : index
    %c0_4 = arith.constant 0 : index
    %8 = vector.load %arg3[%c0_3, %c0_4] : memref<192x1xf32, #tpu.memory_space<vmem>>, vector<192x1xf32>
    %cst = arith.constant 0.000000e+00 : f32
    %9 = vector.shape_cast %8 : vector<192x1xf32> to vector<192x1xf32>
    %10 = vector.broadcast %9 : vector<192x1xf32> to vector<192x128xf32>
    %11 = vector.broadcast %cst : f32 to vector<192x128xf32>
    %12 = arith.select %7, %10, %11 : vector<192x128xi1>, vector<192x128xf32>
    %cst_5 = arith.constant dense<0.000000e+00> : vector<128xf32>
    %13 = vector.multi_reduction <add>, %12, %cst_5 [0] : vector<192x128xf32> to vector<128xf32>
    %14 = vector.shape_cast %13 : vector<128xf32> to vector<1x128xf32>
    %c0_6 = arith.constant 0 : index
    %15 = memref.load %arg4[%c0_6] : memref<1xf32, #tpu.memory_space<smem>>
    %16 = vector.broadcast %15 : f32 to vector<1x128xf32>
    %17 = arith.addf %14, %16 : vector<1x128xf32>
    %c0_7 = arith.constant 0 : index
    %c0_8 = arith.constant 0 : index
    %18 = vector.load %arg5[%c0_7, %c0_8] : memref<1x128xf32, #tpu.memory_space<vmem>>, vector<1x128xf32>
    tpu.vector_store %arg5[%c0_7, %c0_8], %17 {strides = array<i32>} : memref<1x128xf32, #tpu.memory_space<vmem>>, vector<1x128xf32>,
    return
  }
  func.func @transform_0(%arg0: i32) -> (i32, i32) {
    %c0_i32 = arith.constant 0 : i32
    %c0_i32_0 = arith.constant 0 : i32
    return %arg0, %c0_i32 : i32, i32
  }
  func.func @transform_1(%arg0: i32) -> (i32, i32) {
    %c0_i32 = arith.constant 0 : i32
    %c0_i32_0 = arith.constant 0 : i32
    return %arg0, %c0_i32 : i32, i32
  }
  func.func @transform_2(%arg0: i32) -> (i32, i32) {
    %c0_i32 = arith.constant 0 : i32
    %c0_i32_0 = arith.constant 0 : i32
    %c0_i32_1 = arith.constant 0 : i32
    return %c0_i32, %c0_i32_0 : i32, i32
  }
  func.func @transform_3(%arg0: i32) -> i32 {
    %c0_i32 = arith.constant 0 : i32
    %c0_i32_0 = arith.constant 0 : i32
    return %c0_i32 : i32
  }
  func.func @transform_4(%arg0: i32) -> (i32, i32) {
    %c0_i32 = arith.constant 0 : i32
    %c0_i32_0 = arith.constant 0 : i32
    return %arg0, %c0_i32 : i32, i32
  }
}

</mosaic_0001>

<bundles_post_ra>
// kernel: tpu_custom_call.1
= control target key start
LH: loop header
LB: loop body
LE: loop exit
PB: predicated region body
PF: predicated region fallthrough
CT: control target
= control target key end

     0   :  { %v371_v2 = vmov 0   ;;  %s618_s0 = inlined_call_operand.vmem [shape: s32[1,128], index: 0, kind: input, shape index: {}]   ;;  %s619_s1 = inlined_call_operand.vmem [shape: s32[1,128], index: 1, kind: input, shape index: {}]   ;;  %s620_s2 = inlined_call_operand.vmem [shape: f32[192,1], index: 2, kind: input, shape index: {}]   ;;  %s621_s3 = inlined_call_operand.<no memory space> [shape: f32[1], index: 3, kind: input, shape index: {}]   ;;  %s622_s4 = inlined_call_operand.hbm [shape: f32[1,128], index: 4, kind: output, shape index: {}]  }
   0x1   :  { %v128_v0 = vld [vmem:[%s620_s2 + $0x10] sm:$0xff]  ;;  %v126_v1 = vld [vmem:[%s620_s2] sm:$0xff]  ;;  %346 = vset.pattern.permute.xlu1 %v371_v2  ;;  %345 = vset.pattern.permute.xlu0 %v371_v2  ;;  %v129_v3 = vld [vmem:[%s620_s2 + $0x18] sm:$0xff] }
   0x2   :  { %162 = vperm.xlu1 %346, %v128_v0   ;;  %152 = vperm.xlu0 %345, %v126_v1   ;;  %v127_v4 = vld [vmem:[%s620_s2 + $0x8] sm:$0xff]  ;;  %v130_v6 = vld [vmem:[%s620_s2 + $0x20] sm:$0xff] }
   0x3   :  { %v131_v5 = vld [vmem:[%s620_s2 + $0x28] sm:$0xff] }
   0x6   :  { %167 = vperm.xlu1 %346, %v129_v3   ;;  %157 = vperm.xlu0 %345, %v127_v4  }
   0x7   :  { %10 = vsyncpa [#allocation4], 0  ;;  %v133_v7 = vld [vmem:[%s620_s2 + $0x38] sm:$0xff]  ;;  %v132_v8 = vld [vmem:[%s620_s2 + $0x30] sm:$0xff]  ;;  %v19_v25 = vlaneseq }
   0x8   :  { %v135_v9 = vld [vmem:[%s620_s2 + $0x48] sm:$0xff]  ;;  %v134_v10 = vld [vmem:[%s620_s2 + $0x40] sm:$0xff]  ;;  %v137_v11 = vld [vmem:[%s620_s2 + $0x58] sm:$0xff] }
   0x9   :  { %v136_v12 = vld [vmem:[%s620_s2 + $0x50] sm:$0xff]  ;;  %v139_v13 = vld [vmem:[%s620_s2 + $0x68] sm:$0xff]  ;;  %v138_v14 = vld [vmem:[%s620_s2 + $0x60] sm:$0xff]  ;;  %v470_v26 = vshrl.u32 %v19_v25, 7 }
   0xa   :  { %177 = vperm.xlu1 %346, %v131_v5   ;;  %172 = vperm.xlu0 %345, %v130_v6   ;;  %v141_v15 = vld [vmem:[%s620_s2 + $0x78] sm:$0xff]  ;;  %v140_v16 = vld [vmem:[%s620_s2 + $0x70] sm:$0xff]  ;;  %v143_v17 = vld [vmem:[%s620_s2 + $0x88] sm:$0xff] }
   0xb   :  { %v142_v18 = vld [vmem:[%s620_s2 + $0x80] sm:$0xff]  ;;  %v145_v19 = vld [vmem:[%s620_s2 + $0x98] sm:$0xff]  ;;  %v144_v20 = vld [vmem:[%s620_s2 + $0x90] sm:$0xff]  ;;  %v21_v29 = vadd.s32 8, %v470_v26  ;;  %v22_v30 = vadd.s32 16, %v470_v26  ;;  %v23_v31 = vadd.s32 24, %v470_v26 }
   0xc   :  { %v147_v21 = vld [vmem:[%s620_s2 + $0xa8] sm:$0xff]  ;;  %v146_v22 = vld [vmem:[%s620_s2 + $0xa0] sm:$0xff]  ;;  %v149_v23 = vld [vmem:[%s620_s2 + $0xb8] sm:$0xff]  ;;  %v24_v34 = vadd.s32 32, %v470_v26  ;;  %v25_v35 = vadd.s32 40, %v470_v26  ;;  %v26_v40 = vadd.s32 48, %v470_v26 }
   0xd   :  { %v148_v24 = vld [vmem:[%s620_s2 + $0xb0] sm:$0xff]  ;;  %v475_v27 = vld [vmem:[%s618_s0] ss:$0 sm:$0xff]  ;;  %v27_v44 = vadd.s32 56, %v470_v26  ;;  %v28_v49 = vadd.s32 64, %v470_v26  ;;  %v29_v53 = vadd.s32 72, %v470_v26 }
   0xe   :  { %187 = vperm.xlu1 %346, %v133_v7   ;;  %182 = vperm.xlu0 %345, %v132_v8   ;;  %v480_v28 = vld [vmem:[%s619_s1] ss:$0 sm:$0xff]  ;;  %vm49_vm0 = vcmp.eq.s32.totalorder %v470_v26, %v475_v27  ;;  %vm50_vm2 = vcmp.eq.s32.totalorder %v21_v29, %v475_v27  ;;  %vm51_vm4 = vcmp.eq.s32.totalorder %v22_v30, %v475_v27  ;;  %v30_v58 = vadd.s32 80, %v470_v26  ;;  %s372_s2 = smov [#allocation3]  }
   0xf   :  { %vm78_vm1 = vcmp.eq.s32.totalorder %v470_v26, %v480_v28  ;;  %vm79_vm3 = vcmp.eq.s32.totalorder %v21_v29, %v480_v28  ;;  %vm80_vm5 = vcmp.eq.s32.totalorder %v22_v30, %v480_v28  ;;  %vm52_vm8 = vcmp.eq.s32.totalorder %v23_v31, %v475_v27  ;;  %s333_s15 = sshll.u32 %s372_s2, 4  ;;  %s334_s15 = int_to_ptr.vmem [resolvable:$true] %s333_s15 }
  0x10   :  { %vm102_vm6 = vmor %vm49_vm0, %vm78_vm1  ;;  %vm81_vm9 = vcmp.eq.s32.totalorder %v23_v31, %v480_v28  ;;  %vm53_vm11 = vcmp.eq.s32.totalorder %v24_v34, %v475_v27  ;;  %vm82_vm12 = vcmp.eq.s32.totalorder %v24_v34, %v480_v28  ;;  %vm54_vm14 = vcmp.eq.s32.totalorder %v25_v35, %v475_v27  ;;  %s347_s16 = scalar_lea.vmem %s334_s15, 16  ;;  %s351_s17 = scalar_lea.vmem %s334_s15, 32 }
  0x11   :  { %vm103_vm7 = vmor %vm50_vm2, %vm79_vm3  ;;  %vm83_vm15 = vcmp.eq.s32.totalorder %v25_v35, %v480_v28  ;;  %vm55_vm1 = vcmp.eq.s32.totalorder %v26_v40, %v475_v27  ;;  %vm84_vm2 = vcmp.eq.s32.totalorder %v26_v40, %v480_v28  ;;  %v31_v62 = vadd.s32 88, %v470_v26  ;;  %p348_p0 = scmp.ne.s32.totalorder %s334_s15, %s347_s16  ;;  %p352_p1 = scmp.lt.s32.totalorder %s334_s15, %s334_s15 }
  0x12   :  { %197 = vperm.xlu1 %346, %v135_v9   ;;  %192 = vperm.xlu0 %345, %v134_v10   ;;  %vm104_vm10 = vmor %vm51_vm4, %vm80_vm5  ;;  %vm56_vm4 = vcmp.eq.s32.totalorder %v27_v44, %v475_v27  ;;  %vm85_vm5 = vcmp.eq.s32.totalorder %v27_v44, %v480_v28  ;;  %v32_v3 = vadd.s32 96, %v470_v26  ;;  %v33_v7 = vadd.s32 104, %v470_v26  ;;  %p353_p2 = scmp.lt.s32.totalorder %s351_s17, %s347_s16 }
  0x13   :  { %vm500_vm13 = vmor %vm52_vm8, %vm81_vm9  ;;  %vm86_vm8 = vcmp.eq.s32.totalorder %v28_v49, %v480_v28  ;;  %v37_v25 = vadd.s32 136, %v470_v26 }
  0x14   :  { %vm106_vm0 = vmor %vm53_vm11, %vm82_vm12  ;;  %vm87_vm11 = vcmp.eq.s32.totalorder %v29_v53, %v480_v28  ;;  %p354_p3 = por %p353_p2, %p352_p1 }
  0x15   :  { %vm512_vm3 = vmor %vm54_vm14, %vm83_vm15  ;;  %vm88_vm14 = vcmp.eq.s32.totalorder %v30_v58, %v480_v28 }
  0x16   :  { %207 = vperm.xlu1 %346, %v137_v11   ;;  %202 = vperm.xlu0 %345, %v136_v12   ;;  %vm524_vm9 = vmor %vm56_vm4, %vm85_vm5  ;;  %vm90_vm4 = vcmp.eq.s32.totalorder %v32_v3, %v480_v28  ;;  %v34_v12 = vadd.s32 112, %v470_v26  ;;  %p355_p4 = pnand %p354_p3, %p348_p0 }
  0x1a   :  { %217 = vperm.xlu1 %346, %v139_v13   ;;  %212 = vperm.xlu0 %345, %v138_v14  }
  0x1e   :  { %227 = vperm.xlu1 %346, %v141_v15   ;;  %222 = vperm.xlu0 %345, %v140_v16   ;;  %v35_v16 = vadd.s32 120, %v470_v26 }
  0x22   :  { %237 = vperm.xlu1 %346, %v143_v17   ;;  %232 = vperm.xlu0 %345, %v142_v18  }
  0x26   :  { %247 = vperm.xlu1 %346, %v145_v19   ;;  %242 = vperm.xlu0 %345, %v144_v20  }
  0x2a   :  { %257 = vperm.xlu1 %346, %v147_v21   ;;  %252 = vperm.xlu0 %345, %v146_v22   ;;  %v36_v21 = vadd.s32 128, %v470_v26 }
  0x2e   :  { %267 = vperm.xlu1 %346, %v149_v23   ;;  %262 = vperm.xlu0 %345, %v148_v24  }
  0x81   :  { %v163_v32 = vpop.permute.xlu1 %162  ;;  %v153_v33 = vpop.permute.xlu0 %152 }
  0x82   :  { %v270_v38 = vsel %vm102_vm6, %v153_v33, 0.0  ;;  %v272_v43 = vsel %vm104_vm10, %v163_v32, 0.0  ;;  %vm108_vm6 = vmor %vm55_vm1, %vm84_vm2  ;;  %vm58_vm10 = vcmp.eq.s32.totalorder %v29_v53, %v475_v27  ;;  %vm89_vm1 = vcmp.eq.s32.totalorder %v31_v62, %v480_v28 }
  0x83   :  { %vm536_vm15 = vmor %vm58_vm10, %vm87_vm11  ;;  %vm92_vm10 = vcmp.eq.s32.totalorder %v34_v12, %v480_v28  ;;  %v38_v33 = vadd.s32 144, %v470_v26 }
  0x85   :  { %v168_v36 = vpop.permute.xlu1 %167  ;;  %v158_v37 = vpop.permute.xlu0 %157 }
  0x86   :  { %v271_v39 = vsel %vm103_vm7, %v158_v37, 0.0  ;;  %v273_v48 = vsel %vm500_vm13, %v168_v36, 0.0  ;;  %vm57_vm7 = vcmp.eq.s32.totalorder %v28_v49, %v475_v27  ;;  %vm59_vm13 = vcmp.eq.s32.totalorder %v30_v58, %v475_v27 }
  0x87   :  { %v294_v42 = vadd.f32 %v271_v39, %v270_v38  ;;  %vm110_vm12 = vmor %vm57_vm7, %vm86_vm8  ;;  %vm91_vm7 = vcmp.eq.s32.totalorder %v33_v7, %v480_v28  ;;  %v39_v37 = vadd.s32 152, %v470_v26 }
  0x88   :  { %vm112_vm2 = vmor %vm59_vm13, %vm88_vm14  ;;  %vm93_vm13 = vcmp.eq.s32.totalorder %v35_v16, %v480_v28 }
  0x89   :  { %v295_v45 = vadd.f32 %v294_v42, %v272_v43  ;;  %v178_v46 = vpop.permute.xlu1 %177  ;;  %v173_v47 = vpop.permute.xlu0 %172  ;;  %v40_v42 = vadd.s32 160, %v470_v26 }
  0x8a   :  { %v274_v52 = vsel %vm106_vm0, %v173_v47, 0.0  ;;  %v275_v57 = vsel %vm512_vm3, %v178_v46, 0.0  ;;  %vm60_vm0 = vcmp.eq.s32.totalorder %v31_v62, %v475_v27  ;;  %vm61_vm3 = vcmp.eq.s32.totalorder %v32_v3, %v475_v27 }
  0x8b   :  { %v296_v51 = vadd.f32 %v295_v45, %v273_v48  ;;  %vm548_vm5 = vmor %vm60_vm0, %vm89_vm1  ;;  %vm94_vm0 = vcmp.eq.s32.totalorder %v36_v21, %v480_v28  ;;  %v41_v46 = vadd.s32 168, %v470_v26 }
  0x8c   :  { %vm114_vm8 = vmor %vm61_vm3, %vm90_vm4  ;;  %vm95_vm3 = vcmp.eq.s32.totalorder %v37_v25, %v480_v28 }
  0x8d   :  { %v297_v54 = vadd.f32 %v296_v51, %v274_v52  ;;  %v188_v55 = vpop.permute.xlu1 %187  ;;  %v183_v56 = vpop.permute.xlu0 %182  ;;  %v42_v51 = vadd.s32 176, %v470_v26 }
  0x8e   :  { %v276_v61 = vsel %vm108_vm6, %v183_v56, 0.0  ;;  %v277_v2 = vsel %vm524_vm9, %v188_v55, 0.0  ;;  %vm62_vm6 = vcmp.eq.s32.totalorder %v33_v7, %v475_v27  ;;  %vm63_vm9 = vcmp.eq.s32.totalorder %v34_v12, %v475_v27 }
  0x8f   :  { %v298_v60 = vadd.f32 %v297_v54, %v275_v57  ;;  %vm560_vm11 = vmor %vm62_vm6, %vm91_vm7  ;;  %vm96_vm6 = vcmp.eq.s32.totalorder %v38_v33, %v480_v28  ;;  %v43_v54 = vadd.s32 184, %v470_v26 }
  0x90   :  { %vm116_vm14 = vmor %vm63_vm9, %vm92_vm10  ;;  %vm97_vm9 = vcmp.eq.s32.totalorder %v39_v37, %v480_v28 }
  0x91   :  { %v299_v63 = vadd.f32 %v298_v60, %v276_v61  ;;  %v198_v0 = vpop.permute.xlu1 %197  ;;  %v193_v1 = vpop.permute.xlu0 %192 }
  0x92   :  { %v278_v6 = vsel %vm110_vm12, %v193_v1, 0.0  ;;  %v279_v11 = vsel %vm536_vm15, %v198_v0, 0.0  ;;  %vm64_vm12 = vcmp.eq.s32.totalorder %v35_v16, %v475_v27  ;;  %vm65_vm15 = vcmp.eq.s32.totalorder %v36_v21, %v475_v27 }
  0x93   :  { %v300_v5 = vadd.f32 %v299_v63, %v277_v2  ;;  %vm572_vm1 = vmor %vm64_vm12, %vm93_vm13  ;;  %vm98_vm12 = vcmp.eq.s32.totalorder %v40_v42, %v480_v28 }
  0x94   :  { %vm118_vm4 = vmor %vm65_vm15, %vm94_vm0  ;;  %vm99_vm15 = vcmp.eq.s32.totalorder %v41_v46, %v480_v28 }
  0x95   :  { %v301_v8 = vadd.f32 %v300_v5, %v278_v6  ;;  %v208_v9 = vpop.permute.xlu1 %207  ;;  %v203_v10 = vpop.permute.xlu0 %202 }
  0x96   :  { %v280_v15 = vsel %vm112_vm2, %v203_v10, 0.0  ;;  %v281_v20 = vsel %vm548_vm5, %v208_v9, 0.0  ;;  %vm66_vm2 = vcmp.eq.s32.totalorder %v37_v25, %v475_v27  ;;  %vm67_vm5 = vcmp.eq.s32.totalorder %v38_v33, %v475_v27 }
  0x97   :  { %v302_v14 = vadd.f32 %v301_v8, %v279_v11  ;;  %vm584_vm7 = vmor %vm66_vm2, %vm95_vm3  ;;  %vm100_vm2 = vcmp.eq.s32.totalorder %v42_v51, %v480_v28 }
  0x98   :  { %vm120_vm10 = vmor %vm67_vm5, %vm96_vm6  ;;  %vm101_vm5 = vcmp.eq.s32.totalorder %v43_v54, %v480_v28 }
  0x99   :  { %v303_v17 = vadd.f32 %v302_v14, %v280_v15  ;;  %v218_v18 = vpop.permute.xlu1 %217  ;;  %v213_v19 = vpop.permute.xlu0 %212 }
  0x9a   :  { %v282_v24 = vsel %vm114_vm8, %v213_v19, 0.0  ;;  %v283_v32 = vsel %vm560_vm11, %v218_v18, 0.0  ;;  %vm68_vm8 = vcmp.eq.s32.totalorder %v39_v37, %v475_v27  ;;  %vm69_vm11 = vcmp.eq.s32.totalorder %v40_v42, %v475_v27 }
  0x9b   :  { %v304_v23 = vadd.f32 %v303_v17, %v281_v20  ;;  %vm121_vm13 = vmor %vm68_vm8, %vm97_vm9 }
  0x9c   :  { %vm122_vm0 = vmor %vm69_vm11, %vm98_vm12 }
  0x9d   :  { %v305_v29 = vadd.f32 %v304_v23, %v282_v24  ;;  %v228_v30 = vpop.permute.xlu1 %227  ;;  %v223_v31 = vpop.permute.xlu0 %222 }
  0x9e   :  { %v284_v36 = vsel %vm116_vm14, %v223_v31, 0.0  ;;  %v285_v41 = vsel %vm572_vm1, %v228_v30, 0.0  ;;  %vm70_vm14 = vcmp.eq.s32.totalorder %v41_v46, %v475_v27  ;;  %vm71_vm1 = vcmp.eq.s32.totalorder %v42_v51, %v475_v27 }
  0x9f   :  { %v306_v35 = vadd.f32 %v305_v29, %v283_v32  ;;  %vm123_vm3 = vmor %vm70_vm14, %vm99_vm15 }
  0xa0   :  { %vm124_vm6 = vmor %vm71_vm1, %vm100_vm2 }
  0xa1   :  { %v307_v38 = vadd.f32 %v306_v35, %v284_v36  ;;  %v238_v39 = vpop.permute.xlu1 %237  ;;  %v233_v40 = vpop.permute.xlu0 %232 }
  0xa2   :  { %v286_v45 = vsel %vm118_vm4, %v233_v40, 0.0  ;;  %v287_v50 = vsel %vm584_vm7, %v238_v39, 0.0  ;;  %vm72_vm4 = vcmp.eq.s32.totalorder %v43_v54, %v475_v27  ;;  %v324_v27 = vstv %s621_s3 }
  0xa3   :  { %v308_v44 = vadd.f32 %v307_v38, %v285_v41  ;;  %vm125_vm7 = vmor %vm72_vm4, %vm101_vm5 }
  0xa5   :  { %v309_v47 = vadd.f32 %v308_v44, %v286_v45  ;;  %v248_v48 = vpop.permute.xlu1 %247  ;;  %v243_v49 = vpop.permute.xlu0 %242 }
  0xa6   :  { %v288_v53 = vsel %vm120_vm10, %v243_v49, 0.0  ;;  %v289_v58 = vsel %vm121_vm13, %v248_v48, 0.0 }
  0xa7   :  { %v310_v52 = vadd.f32 %v309_v47, %v287_v50 }
  0xa9   :  { %v311_v55 = vadd.f32 %v310_v52, %v288_v53  ;;  %v258_v56 = vpop.permute.xlu1 %257  ;;  %v253_v57 = vpop.permute.xlu0 %252 }
  0xaa   :  { %v290_v60 = vsel %vm122_vm0, %v253_v57, 0.0  ;;  %v291_v26 = vsel %vm123_vm3, %v258_v56, 0.0 }
  0xab   :  { %v312_v59 = vadd.f32 %v311_v55, %v289_v58 }
  0xad   :  { %v313_v61 = vadd.f32 %v312_v59, %v290_v60  ;;  %v263_v62 = vpop.permute.xlu0 %262  ;;  %v268_v63 = vpop.permute.xlu1 %267 }
  0xae   :  { %v292_v1 = vsel %vm124_vm6, %v263_v62, 0.0  ;;  %v293_v3 = vsel %vm125_vm7, %v268_v63, 0.0 }
  0xaf   :  { %v314_v0 = vadd.f32 %v313_v61, %v291_v26 }
  0xb1   :  { %v315_v2 = vadd.f32 %v314_v0, %v292_v1 }
  0xb3   :  { %v316_v4 = vadd.f32 %v315_v2, %v293_v3 }
  0xb5   :  { %v317_v5 = vrot.slane %v316_v4, 4 }
  0xb7   :  { %v318_v6 = vadd.f32 %v317_v5, %v316_v4 }
  0xb9   :  { %v319_v7 = vrot.slane %v318_v6, 2 }
  0xbb   :  { %v320_v8 = vadd.f32 %v319_v7, %v318_v6 }
  0xbd   :  { %v321_v9 = vrot.slane %v320_v8, 1 }
  0xbf   :  { %v322_v28 = vadd.f32 %v321_v9, %v320_v8 }
  0xc1   :  { %v325_v10 = vadd.f32 %v324_v27, %v322_v28 }
  0xc3   :  { %326 = vst [vmem:[#allocation3] sm:$0x1] %v325_v10 }
  0xc4   :  { %358 = shalt.err (!%p355_p4)
}
  0xc5   :  { %s359_s20 = scalar_lea.hbm %s622_s4, 16 }
  0xc6   :  { %p360_p5 = scmp.ne.s32.totalorder %s622_s4, %s359_s20  ;;  %p363_p6 = scmp.lt.u32.totalorder %s359_s20, %s622_s4 }
  0xc8   :  { %p365_p7 = pnand %p363_p6, %p360_p5 }
  0xca   :  { %368 = shalt.err (!%p365_p7)
}
  0xcb   :  { %336 = dma.vmem_to_hbm [thread:$0]  %s334_s15, 16, %s622_s4, [#allocation4]  }
  0xcc   :  { %369 = dma.done.wait [#allocation4], 16  }
  0xcd   :  { %370 = vsyncadd [#allocation4], 4294967280 }
  0xce   :  { %340 = vsyncpa [#allocation4], 1 }

</bundles_post_ra>
